<compile_context>
chip_gen: v5e
topology: v5e:2x2
jax: 0.10.0
libtpu: 0.0.40
codegen_flags: <defaults>
</compile_context>

<pallas_src>
import functools

import jax
import jax.numpy as jnp
from jax.experimental import pallas as pl
from jax.experimental.pallas import tpu as pltpu


def msa_kernel(x_ref, wqkv_ref, bqkv_ref, wo_ref, bo_ref, y_ref, *, B, S, D, H):
    """Single grid step over the whole batch.

    x_ref    : (B*S, D)   bf16  all batch rows folded into the matmul M dim
    wqkv_ref : (D, H*3D)  bf16  fused per-head QKV weights (x @ W form); head h
                                occupies columns [h*3D, (h+1)*3D); q columns are
                                pre-scaled by (D/H)^-0.5 in the wrapper
    bqkv_ref : (1, H*3D)  f32   fused per-head QKV bias (q part pre-scaled)
    wo_ref   : (H*D, D)   bf16  output projection weight (x @ W form)
    bo_ref   : (1, D)     f32   output projection bias
    y_ref    : (B*S, D)   f32   output
    """
    x = x_ref[...]                                           # (B*S, D) bf16

    # One wide MXU pass for every head's Q/K/V, one bias add, one bf16 cast.
    qkv = jnp.dot(x, wqkv_ref[...], preferred_element_type=jnp.float32)
    qkv = (qkv + bqkv_ref[0]).astype(jnp.bfloat16)           # (B*S, H*3D) bf16

    acc = jnp.zeros((B * S, D), jnp.float32)                 # fused out-proj accumulator
    for h in range(H):                                       # static unroll (H is small)
        base = 3 * D * h
        q = qkv[:, base:base + D].reshape(B, S, D)           # scale already folded in
        k = qkv[:, base + D:base + 2 * D].reshape(B, S, D)
        v = qkv[:, base + 2 * D:base + 3 * D].reshape(B, S, D)

        # q @ k^T batched over B, contracting last dims (no transpose needed).
        scores = jnp.einsum("bqd,bkd->bqk", q, k,
                            preferred_element_type=jnp.float32)       # (B, S, S) f32

        # Numerically stable softmax along the key axis; divide -> EUP reciprocal.
        scores = scores - jnp.max(scores, axis=-1, keepdims=True)
        e = jnp.exp(scores)
        attn = e * pl.reciprocal(jnp.sum(e, axis=-1, keepdims=True), approx=True)

        head_out = jnp.einsum("bqk,bkd->bqd", attn.astype(jnp.bfloat16), v,
                              preferred_element_type=jnp.float32)     # (B, S, D) f32

        # Fused "concat + Linear": acc += head_out @ wo[h*D:(h+1)*D, :].
        # TODO(synk): when D % 128 == 0 (real ViT), write head outputs into a
        # lane-aligned (B*S, H*D) bf16 scratch and do one long-K matmul instead.
        acc = acc + jnp.dot(head_out.reshape(B * S, D).astype(jnp.bfloat16),
                            wo_ref[h * D:(h + 1) * D, :],
                            preferred_element_type=jnp.float32)

    y_ref[...] = (acc + bo_ref[0]).astype(y_ref.dtype)


def msa_forward(x, wqkv, bqkv, wo, bo, *, D, H):
    """x: (B,S,D) f32; wqkv: (H,D,3D); bqkv: (H,1,3D); wo: (H*D,D); bo: (1,D)."""
    B, S, _ = x.shape
    scale = (D / H) ** (-0.5)        # matches (self.D / self.head_numb) ** (-0.5)

    # Pre-layout outside the kernel (cheap one-off ops on tiny weights):
    #   * fuse the H QKV projections into one (D, H*3D) weight / (1, H*3D) bias,
    #   * fold the softmax scale into each head's q weight columns + q bias,
    #   * cast MXU operands to bf16 (biases stay f32, added post-accumulation),
    #   * fold B*S into a single M dimension.
    scale_vec = jnp.concatenate([jnp.full((D,), scale, jnp.float32),
                                 jnp.ones((2 * D,), jnp.float32)])      # (3D,)
    wqkv_f = (jnp.transpose(wqkv * scale_vec, (1, 0, 2))
              .reshape(D, H * 3 * D).astype(jnp.bfloat16))              # (D, H*3D)
    bqkv_f = (bqkv * scale_vec).reshape(1, H * 3 * D).astype(jnp.float32)
    x2d = x.reshape(B * S, D).astype(jnp.bfloat16)
    wo_bf16 = wo.astype(jnp.bfloat16)
    bo_f32 = bo.astype(jnp.float32)

    flops = (2 * (B * S) * D * (3 * H * D)                  # fused QKV projection
             + B * H * (4 * S * S * D + 2 * S * D * D))     # attn matmuls + out proj
    transcendentals = B * H * S * S                         # softmax exp
    bytes_accessed = (x2d.size * 2 + wqkv_f.size * 2 + bqkv_f.size * 4
                      + wo_bf16.size * 2 + bo_f32.size * 4 + B * S * D * 4)

    kernel = functools.partial(msa_kernel, B=B, S=S, D=D, H=H)
    out2d = pl.pallas_call(
        kernel,
        out_shape=jax.ShapeDtypeStruct((B * S, D), jnp.float32),
        grid_spec=pltpu.PrefetchScalarGridSpec(
            num_scalar_prefetch=0,
            grid=(1,),                                       # whole problem in one step
            in_specs=[
                pl.BlockSpec((B * S, D), lambda i: (0, 0)),          # x (all rows)
                pl.BlockSpec((D, H * 3 * D), lambda i: (0, 0)),      # fused QKV weight
                pl.BlockSpec((1, H * 3 * D), lambda i: (0, 0)),      # fused QKV bias
                pl.BlockSpec((H * D, D), lambda i: (0, 0)),          # out-proj weight
                pl.BlockSpec((1, D), lambda i: (0, 0)),              # out-proj bias
            ],
            out_specs=pl.BlockSpec((B * S, D), lambda i: (0, 0)),
        ),
        compiler_params=pltpu.CompilerParams(
            dimension_semantics=("arbitrary",)),
        cost_estimate=pl.CostEstimate(flops=flops,
                                      transcendentals=transcendentals,
                                      bytes_accessed=bytes_accessed),
    )(x2d, wqkv_f, bqkv_f, wo_bf16, bo_f32)
    return out2d.reshape(B, S, D)


def msa_reference(x, wqkv, bqkv, wo, bo, *, D, H):
    """Pure-JAX f32 reference of the PyTorch MSA forward for validation."""
    scale = (D / H) ** (-0.5)
    outs = []
    for h in range(H):
        qkv = x @ wqkv[h] + bqkv[h, 0]
        q, k, v = qkv[:, :, :D], qkv[:, :, D:2 * D], qkv[:, :, 2 * D:]
        attn = jax.nn.softmax(jnp.einsum("bsd,btd->bst", q, k) * scale, axis=2)
        outs.append(jnp.einsum("bst,btd->bsd", attn, v))
    concat = jnp.concatenate(outs, axis=2)
    return concat @ wo + bo[0]


if __name__ == "__main__":
    B, S, D, H = 2, 8, 32, 4

    key = jax.random.PRNGKey(0)
    kx, kw, kb, kwo, kbo = jax.random.split(key, 5)

    x = jax.random.normal(kx, (B, S, D), dtype=jnp.float32)

    # Deterministic parameter init (PyTorch-Linear-style uniform bounds).
    lim_qkv = 1.0 / (D ** 0.5)
    wqkv = jax.random.uniform(kw, (H, D, 3 * D), jnp.float32, -lim_qkv, lim_qkv)
    bqkv = jax.random.uniform(kb, (H, 1, 3 * D), jnp.float32, -lim_qkv, lim_qkv)

    lim_o = 1.0 / ((D * H) ** 0.5)
    wo = jax.random.uniform(kwo, (H * D, D), jnp.float32, -lim_o, lim_o)
    bo = jax.random.uniform(kbo, (1, D), jnp.float32, -lim_o, lim_o)

    y = msa_forward(x, wqkv, bqkv, wo, bo, D=D, H=H)
    y = jax.block_until_ready(y)

    y_ref = msa_reference(x, wqkv, bqkv, wo, bo, D=D, H=H)
    assert y.shape == (B, S, D)
    # bf16 MXU inputs + approx reciprocal => relaxed (but still tight) tolerance.
    assert jnp.allclose(y, y_ref, atol=5e-2, rtol=5e-2), "mismatch vs reference"

    print("KERNEL_OK")
</pallas_src>

<mosaic_0001>
module attributes {stable_mosaic.version = 11 : i64} {
  func.func @msa_kernel(%arg0: i32, %arg1: memref<16x32xbf16, #tpu.memory_space<vmem>>, %arg2: memref<32x384xbf16, #tpu.memory_space<vmem>>, %arg3: memref<1x384xf32, #tpu.memory_space<vmem>>, %arg4: memref<128x32xbf16, #tpu.memory_space<vmem>>, %arg5: memref<1x32xf32, #tpu.memory_space<vmem>>, %arg6: memref<16x32xf32, #tpu.memory_space<vmem>>) attributes {dimension_semantics = [#tpu.dimension_semantics<arbitrary>], iteration_bounds = array<i64: 1>, scalar_prefetch = 0 : i64, scratch_operands = 0 : i64, tpu.core_type = #tpu.core_type<tc>, window_params = [{pipeline_mode = #tpu.pipeline_mode<synchronous>, transform_indices = @transform_0, window_bounds = array<i64: 16, 32>}, {pipeline_mode = #tpu.pipeline_mode<synchronous>, transform_indices = @transform_1, window_bounds = array<i64: 32, 384>}, {pipeline_mode = #tpu.pipeline_mode<synchronous>, transform_indices = @transform_2, window_bounds = array<i64: 1, 384>}, {pipeline_mode = #tpu.pipeline_mode<synchronous>, transform_indices = @transform_3, window_bounds = array<i64: 128, 32>}, {pipeline_mode = #tpu.pipeline_mode<synchronous>, transform_indices = @transform_4, window_bounds = array<i64: 1, 32>}, {pipeline_mode = #tpu.pipeline_mode<synchronous>, transform_indices = @transform_5, window_bounds = array<i64: 16, 32>}]} {
    %c0 = arith.constant 0 : index
    %c0_0 = arith.constant 0 : index
    %0 = vector.load %arg1[%c0, %c0_0] : memref<16x32xbf16, #tpu.memory_space<vmem>>, vector<16x32xbf16>
    %c0_1 = arith.constant 0 : index
    %c0_2 = arith.constant 0 : index
    %1 = vector.load %arg2[%c0_1, %c0_2] : memref<32x384xbf16, #tpu.memory_space<vmem>>, vector<32x384xbf16>
    %cst = arith.constant dense<0.000000e+00> : vector<16x384xf32>
    %2 = tpu.matmul %0, %1, %cst {dimension_numbers = #tpu.dot_dimension_numbers<[1], [0], [0], [1], [0, 0, 1, 1], [], []>} : vector<16x32xbf16>, vector<32x384xbf16>, vector<16x384xf32> -> vector<16x384xf32>
    %c0_3 = arith.constant 0 : index
    %c0_4 = arith.constant 0 : index
    %3 = vector.load %arg3[%c0_3, %c0_4] : memref<1x384xf32, #tpu.memory_space<vmem>>, vector<1x384xf32>
    %4 = vector.shape_cast %3 : vector<1x384xf32> to vector<384xf32>
    %5 = vector.shape_cast %4 : vector<384xf32> to vector<1x384xf32>
    %6 = vector.broadcast %5 : vector<1x384xf32> to vector<16x384xf32>
    %7 = arith.addf %2, %6 : vector<16x384xf32>
    %8 = arith.truncf %7 : vector<16x384xf32> to vector<16x384xbf16>
    %cst_5 = arith.constant 0.000000e+00 : f32
    %9 = vector.broadcast %cst_5 : f32 to vector<16x32xf32>
    %10 = vector.extract_strided_slice %8 {offsets = [0, 0], sizes = [16, 32], strides = [1, 1]} : vector<16x384xbf16> to vector<16x32xbf16>
    %11 = vector.shape_cast %10 : vector<16x32xbf16> to vector<2x8x32xbf16>
    %12 = vector.extract_strided_slice %8 {offsets = [0, 32], sizes = [16, 32], strides = [1, 1]} : vector<16x384xbf16> to vector<16x32xbf16>
    %13 = vector.shape_cast %12 : vector<16x32xbf16> to vector<2x8x32xbf16>
    %14 = vector.extract_strided_slice %8 {offsets = [0, 64], sizes = [16, 32], strides = [1, 1]} : vector<16x384xbf16> to vector<16x32xbf16>
    %15 = vector.shape_cast %14 : vector<16x32xbf16> to vector<2x8x32xbf16>
    "tpu.trace_start"() <{level = 10 : i32, message = "bqd,bkd->bqk"}> : () -> ()
    %cst_6 = arith.constant dense<0.000000e+00> : vector<2x8x8xf32>
    %16 = tpu.matmul %11, %13, %cst_6 {dimension_numbers = #tpu.dot_dimension_numbers<[2], [2], [1], [1], [0, 0, 0, 1, 1, 1], [0], [0]>} : vector<2x8x32xbf16>, vector<2x8x32xbf16>, vector<2x8x8xf32> -> vector<2x8x8xf32>
    "tpu.trace_stop"() : () -> ()
    %cst_7 = arith.constant dense<0xFF800000> : vector<2x8xf32>
    %17 = vector.multi_reduction <maximumf>, %16, %cst_7 [2] : vector<2x8x8xf32> to vector<2x8xf32>
    %18 = vector.shape_cast %17 : vector<2x8xf32> to vector<2x8x1xf32>
    %19 = vector.broadcast %18 : vector<2x8x1xf32> to vector<2x8x8xf32>
    %20 = arith.subf %16, %19 : vector<2x8x8xf32>
    %21 = math.exp %20 : vector<2x8x8xf32>
    %cst_8 = arith.constant dense<0.000000e+00> : vector<2x8xf32>
    %22 = vector.multi_reduction <add>, %21, %cst_8 [2] : vector<2x8x8xf32> to vector<2x8xf32>
    %23 = vector.shape_cast %22 : vector<2x8xf32> to vector<2x8x1xf32>
    %24 = tpu.reciprocal %23 {approx = true} : vector<2x8x1xf32> -> vector<2x8x1xf32>
    %25 = vector.broadcast %24 : vector<2x8x1xf32> to vector<2x8x8xf32>
    %26 = arith.mulf %21, %25 : vector<2x8x8xf32>
    %27 = arith.truncf %26 : vector<2x8x8xf32> to vector<2x8x8xbf16>
    "tpu.trace_start"() <{level = 10 : i32, message = "bqk,bkd->bqd"}> : () -> ()
    %cst_9 = arith.constant dense<0.000000e+00> : vector<2x8x32xf32>
    %28 = tpu.matmul %27, %15, %cst_9 {dimension_numbers = #tpu.dot_dimension_numbers<[2], [1], [1], [2], [0, 0, 0, 1, 1, 2], [0], [0]>} : vector<2x8x8xbf16>, vector<2x8x32xbf16>, vector<2x8x32xf32> -> vector<2x8x32xf32>
    "tpu.trace_stop"() : () -> ()
    %29 = vector.shape_cast %28 : vector<2x8x32xf32> to vector<16x32xf32>
    %30 = arith.truncf %29 : vector<16x32xf32> to vector<16x32xbf16>
    %c0_10 = arith.constant 0 : index
    %c0_11 = arith.constant 0 : index
    %31 = vector.load %arg4[%c0_10, %c0_11] : memref<128x32xbf16, #tpu.memory_space<vmem>>, vector<32x32xbf16>
    %cst_12 = arith.constant dense<0.000000e+00> : vector<16x32xf32>
    %32 = tpu.matmul %30, %31, %cst_12 {dimension_numbers = #tpu.dot_dimension_numbers<[1], [0], [0], [1], [0, 0, 1, 1], [], []>} : vector<16x32xbf16>, vector<32x32xbf16>, vector<16x32xf32> -> vector<16x32xf32>
    %33 = arith.addf %9, %32 : vector<16x32xf32>
    %34 = vector.extract_strided_slice %8 {offsets = [0, 96], sizes = [16, 32], strides = [1, 1]} : vector<16x384xbf16> to vector<16x32xbf16>
    %35 = vector.shape_cast %34 : vector<16x32xbf16> to vector<2x8x32xbf16>
    %36 = vector.extract_strided_slice %8 {offsets = [0, 128], sizes = [16, 32], strides = [1, 1]} : vector<16x384xbf16> to vector<16x32xbf16>
    %37 = vector.shape_cast %36 : vector<16x32xbf16> to vector<2x8x32xbf16>
    %38 = vector.extract_strided_slice %8 {offsets = [0, 160], sizes = [16, 32], strides = [1, 1]} : vector<16x384xbf16> to vector<16x32xbf16>
    %39 = vector.shape_cast %38 : vector<16x32xbf16> to vector<2x8x32xbf16>
    "tpu.trace_start"() <{level = 10 : i32, message = "bqd,bkd->bqk"}> : () -> ()
    %cst_13 = arith.constant dense<0.000000e+00> : vector<2x8x8xf32>
    %40 = tpu.matmul %35, %37, %cst_13 {dimension_numbers = #tpu.dot_dimension_numbers<[2], [2], [1], [1], [0, 0, 0, 1, 1, 1], [0], [0]>} : vector<2x8x32xbf16>, vector<2x8x32xbf16>, vector<2x8x8xf32> -> vector<2x8x8xf32>
    "tpu.trace_stop"() : () -> ()
    %cst_14 = arith.constant dense<0xFF800000> : vector<2x8xf32>
    %41 = vector.multi_reduction <maximumf>, %40, %cst_14 [2] : vector<2x8x8xf32> to vector<2x8xf32>
    %42 = vector.shape_cast %41 : vector<2x8xf32> to vector<2x8x1xf32>
    %43 = vector.broadcast %42 : vector<2x8x1xf32> to vector<2x8x8xf32>
    %44 = arith.subf %40, %43 : vector<2x8x8xf32>
    %45 = math.exp %44 : vector<2x8x8xf32>
    %cst_15 = arith.constant dense<0.000000e+00> : vector<2x8xf32>
    %46 = vector.multi_reduction <add>, %45, %cst_15 [2] : vector<2x8x8xf32> to vector<2x8xf32>
    %47 = vector.shape_cast %46 : vector<2x8xf32> to vector<2x8x1xf32>
    %48 = tpu.reciprocal %47 {approx = true} : vector<2x8x1xf32> -> vector<2x8x1xf32>
    %49 = vector.broadcast %48 : vector<2x8x1xf32> to vector<2x8x8xf32>
    %50 = arith.mulf %45, %49 : vector<2x8x8xf32>
    %51 = arith.truncf %50 : vector<2x8x8xf32> to vector<2x8x8xbf16>
    "tpu.trace_start"() <{level = 10 : i32, message = "bqk,bkd->bqd"}> : () -> ()
    %cst_16 = arith.constant dense<0.000000e+00> : vector<2x8x32xf32>
    %52 = tpu.matmul %51, %39, %cst_16 {dimension_numbers = #tpu.dot_dimension_numbers<[2], [1], [1], [2], [0, 0, 0, 1, 1, 2], [0], [0]>} : vector<2x8x8xbf16>, vector<2x8x32xbf16>, vector<2x8x32xf32> -> vector<2x8x32xf32>
    "tpu.trace_stop"() : () -> ()
    %53 = vector.shape_cast %52 : vector<2x8x32xf32> to vector<16x32xf32>
    %54 = arith.truncf %53 : vector<16x32xf32> to vector<16x32xbf16>
    %c32 = arith.constant 32 : index
    %c0_17 = arith.constant 0 : index
    %55 = vector.load %arg4[%c32, %c0_17] : memref<128x32xbf16, #tpu.memory_space<vmem>>, vector<32x32xbf16>
    %cst_18 = arith.constant dense<0.000000e+00> : vector<16x32xf32>
    %56 = tpu.matmul %54, %55, %cst_18 {dimension_numbers = #tpu.dot_dimension_numbers<[1], [0], [0], [1], [0, 0, 1, 1], [], []>} : vector<16x32xbf16>, vector<32x32xbf16>, vector<16x32xf32> -> vector<16x32xf32>
    %57 = arith.addf %33, %56 : vector<16x32xf32>
    %58 = vector.extract_strided_slice %8 {offsets = [0, 192], sizes = [16, 32], strides = [1, 1]} : vector<16x384xbf16> to vector<16x32xbf16>
    %59 = vector.shape_cast %58 : vector<16x32xbf16> to vector<2x8x32xbf16>
    %60 = vector.extract_strided_slice %8 {offsets = [0, 224], sizes = [16, 32], strides = [1, 1]} : vector<16x384xbf16> to vector<16x32xbf16>
    %61 = vector.shape_cast %60 : vector<16x32xbf16> to vector<2x8x32xbf16>
    %62 = vector.extract_strided_slice %8 {offsets = [0, 256], sizes = [16, 32], strides = [1, 1]} : vector<16x384xbf16> to vector<16x32xbf16>
    %63 = vector.shape_cast %62 : vector<16x32xbf16> to vector<2x8x32xbf16>
    "tpu.trace_start"() <{level = 10 : i32, message = "bqd,bkd->bqk"}> : () -> ()
    %cst_19 = arith.constant dense<0.000000e+00> : vector<2x8x8xf32>
    %64 = tpu.matmul %59, %61, %cst_19 {dimension_numbers = #tpu.dot_dimension_numbers<[2], [2], [1], [1], [0, 0, 0, 1, 1, 1], [0], [0]>} : vector<2x8x32xbf16>, vector<2x8x32xbf16>, vector<2x8x8xf32> -> vector<2x8x8xf32>
    "tpu.trace_stop"() : () -> ()
    %cst_20 = arith.constant dense<0xFF800000> : vector<2x8xf32>
    %65 = vector.multi_reduction <maximumf>, %64, %cst_20 [2] : vector<2x8x8xf32> to vector<2x8xf32>
    %66 = vector.shape_cast %65 : vector<2x8xf32> to vector<2x8x1xf32>
    %67 = vector.broadcast %66 : vector<2x8x1xf32> to vector<2x8x8xf32>
    %68 = arith.subf %64, %67 : vector<2x8x8xf32>
    %69 = math.exp %68 : vector<2x8x8xf32>
    %cst_21 = arith.constant dense<0.000000e+00> : vector<2x8xf32>
    %70 = vector.multi_reduction <add>, %69, %cst_21 [2] : vector<2x8x8xf32> to vector<2x8xf32>
    %71 = vector.shape_cast %70 : vector<2x8xf32> to vector<2x8x1xf32>
    %72 = tpu.reciprocal %71 {approx = true} : vector<2x8x1xf32> -> vector<2x8x1xf32>
    %73 = vector.broadcast %72 : vector<2x8x1xf32> to vector<2x8x8xf32>
    %74 = arith.mulf %69, %73 : vector<2x8x8xf32>
    %75 = arith.truncf %74 : vector<2x8x8xf32> to vector<2x8x8xbf16>
    "tpu.trace_start"() <{level = 10 : i32, message = "bqk,bkd->bqd"}> : () -> ()
    %cst_22 = arith.constant dense<0.000000e+00> : vector<2x8x32xf32>
    %76 = tpu.matmul %75, %63, %cst_22 {dimension_numbers = #tpu.dot_dimension_numbers<[2], [1], [1], [2], [0, 0, 0, 1, 1, 2], [0], [0]>} : vector<2x8x8xbf16>, vector<2x8x32xbf16>, vector<2x8x32xf32> -> vector<2x8x32xf32>
    "tpu.trace_stop"() : () -> ()
    %77 = vector.shape_cast %76 : vector<2x8x32xf32> to vector<16x32xf32>
    %78 = arith.truncf %77 : vector<16x32xf32> to vector<16x32xbf16>
    %c64 = arith.constant 64 : index
    %c0_23 = arith.constant 0 : index
    %79 = vector.load %arg4[%c64, %c0_23] : memref<128x32xbf16, #tpu.memory_space<vmem>>, vector<32x32xbf16>
    %cst_24 = arith.constant dense<0.000000e+00> : vector<16x32xf32>
    %80 = tpu.matmul %78, %79, %cst_24 {dimension_numbers = #tpu.dot_dimension_numbers<[1], [0], [0], [1], [0, 0, 1, 1], [], []>} : vector<16x32xbf16>, vector<32x32xbf16>, vector<16x32xf32> -> vector<16x32xf32>
    %81 = arith.addf %57, %80 : vector<16x32xf32>
    %82 = vector.extract_strided_slice %8 {offsets = [0, 288], sizes = [16, 32], strides = [1, 1]} : vector<16x384xbf16> to vector<16x32xbf16>
    %83 = vector.shape_cast %82 : vector<16x32xbf16> to vector<2x8x32xbf16>
    %84 = vector.extract_strided_slice %8 {offsets = [0, 320], sizes = [16, 32], strides = [1, 1]} : vector<16x384xbf16> to vector<16x32xbf16>
    %85 = vector.shape_cast %84 : vector<16x32xbf16> to vector<2x8x32xbf16>
    %86 = vector.extract_strided_slice %8 {offsets = [0, 352], sizes = [16, 32], strides = [1, 1]} : vector<16x384xbf16> to vector<16x32xbf16>
    %87 = vector.shape_cast %86 : vector<16x32xbf16> to vector<2x8x32xbf16>
    "tpu.trace_start"() <{level = 10 : i32, message = "bqd,bkd->bqk"}> : () -> ()
    %cst_25 = arith.constant dense<0.000000e+00> : vector<2x8x8xf32>
    %88 = tpu.matmul %83, %85, %cst_25 {dimension_numbers = #tpu.dot_dimension_numbers<[2], [2], [1], [1], [0, 0, 0, 1, 1, 1], [0], [0]>} : vector<2x8x32xbf16>, vector<2x8x32xbf16>, vector<2x8x8xf32> -> vector<2x8x8xf32>
    "tpu.trace_stop"() : () -> ()
    %cst_26 = arith.constant dense<0xFF800000> : vector<2x8xf32>
    %89 = vector.multi_reduction <maximumf>, %88, %cst_26 [2] : vector<2x8x8xf32> to vector<2x8xf32>
    %90 = vector.shape_cast %89 : vector<2x8xf32> to vector<2x8x1xf32>
    %91 = vector.broadcast %90 : vector<2x8x1xf32> to vector<2x8x8xf32>
    %92 = arith.subf %88, %91 : vector<2x8x8xf32>
    %93 = math.exp %92 : vector<2x8x8xf32>
    %cst_27 = arith.constant dense<0.000000e+00> : vector<2x8xf32>
    %94 = vector.multi_reduction <add>, %93, %cst_27 [2] : vector<2x8x8xf32> to vector<2x8xf32>
    %95 = vector.shape_cast %94 : vector<2x8xf32> to vector<2x8x1xf32>
    %96 = tpu.reciprocal %95 {approx = true} : vector<2x8x1xf32> -> vector<2x8x1xf32>
    %97 = vector.broadcast %96 : vector<2x8x1xf32> to vector<2x8x8xf32>
    %98 = arith.mulf %93, %97 : vector<2x8x8xf32>
    %99 = arith.truncf %98 : vector<2x8x8xf32> to vector<2x8x8xbf16>
    "tpu.trace_start"() <{level = 10 : i32, message = "bqk,bkd->bqd"}> : () -> ()
    %cst_28 = arith.constant dense<0.000000e+00> : vector<2x8x32xf32>
    %100 = tpu.matmul %99, %87, %cst_28 {dimension_numbers = #tpu.dot_dimension_numbers<[2], [1], [1], [2], [0, 0, 0, 1, 1, 2], [0], [0]>} : vector<2x8x8xbf16>, vector<2x8x32xbf16>, vector<2x8x32xf32> -> vector<2x8x32xf32>
    "tpu.trace_stop"() : () -> ()
    %101 = vector.shape_cast %100 : vector<2x8x32xf32> to vector<16x32xf32>
    %102 = arith.truncf %101 : vector<16x32xf32> to vector<16x32xbf16>
    %c96 = arith.constant 96 : index
    %c0_29 = arith.constant 0 : index
    %103 = vector.load %arg4[%c96, %c0_29] : memref<128x32xbf16, #tpu.memory_space<vmem>>, vector<32x32xbf16>
    %cst_30 = arith.constant dense<0.000000e+00> : vector<16x32xf32>
    %104 = tpu.matmul %102, %103, %cst_30 {dimension_numbers = #tpu.dot_dimension_numbers<[1], [0], [0], [1], [0, 0, 1, 1], [], []>} : vector<16x32xbf16>, vector<32x32xbf16>, vector<16x32xf32> -> vector<16x32xf32>
    %105 = arith.addf %81, %104 : vector<16x32xf32>
    %c0_31 = arith.constant 0 : index
    %c0_32 = arith.constant 0 : index
    %106 = vector.load %arg5[%c0_31, %c0_32] : memref<1x32xf32, #tpu.memory_space<vmem>>, vector<1x32xf32>
    %107 = vector.shape_cast %106 : vector<1x32xf32> to vector<32xf32>
    %108 = vector.shape_cast %107 : vector<32xf32> to vector<1x32xf32>
    %109 = vector.broadcast %108 : vector<1x32xf32> to vector<16x32xf32>
    %110 = arith.addf %105, %109 : vector<16x32xf32>
    %c0_33 = arith.constant 0 : index
    %c0_34 = arith.constant 0 : index
    %111 = vector.load %arg6[%c0_33, %c0_34] : memref<16x32xf32, #tpu.memory_space<vmem>>, vector<16x32xf32>
    tpu.vector_store %arg6[%c0_33, %c0_34], %110 {strides = array<i32>} : memref<16x32xf32, #tpu.memory_space<vmem>>, vector<16x32xf32>,
    return
  }
  func.func @transform_0(%arg0: i32) -> (i32, i32) {
    %c0_i32 = arith.constant 0 : i32
    %c0_i32_0 = arith.constant 0 : i32
    %c0_i32_1 = arith.constant 0 : i32
    return %c0_i32, %c0_i32_0 : i32, i32
  }
  func.func @transform_1(%arg0: i32) -> (i32, i32) {
    %c0_i32 = arith.constant 0 : i32
    %c0_i32_0 = arith.constant 0 : i32
    %c0_i32_1 = arith.constant 0 : i32
    return %c0_i32, %c0_i32_0 : i32, i32
  }
  func.func @transform_2(%arg0: i32) -> (i32, i32) {
    %c0_i32 = arith.constant 0 : i32
    %c0_i32_0 = arith.constant 0 : i32
    %c0_i32_1 = arith.constant 0 : i32
    return %c0_i32, %c0_i32_0 : i32, i32
  }
  func.func @transform_3(%arg0: i32) -> (i32, i32) {
    %c0_i32 = arith.constant 0 : i32
    %c0_i32_0 = arith.constant 0 : i32
    %c0_i32_1 = arith.constant 0 : i32
    return %c0_i32, %c0_i32_0 : i32, i32
  }
  func.func @transform_4(%arg0: i32) -> (i32, i32) {
    %c0_i32 = arith.constant 0 : i32
    %c0_i32_0 = arith.constant 0 : i32
    %c0_i32_1 = arith.constant 0 : i32
    return %c0_i32, %c0_i32_0 : i32, i32
  }
  func.func @transform_5(%arg0: i32) -> (i32, i32) {
    %c0_i32 = arith.constant 0 : i32
    %c0_i32_0 = arith.constant 0 : i32
    %c0_i32_1 = arith.constant 0 : i32
    return %c0_i32, %c0_i32_0 : i32, i32
  }
}

</mosaic_0001>

<bundles_post_ra>
// kernel: tpu_custom_call.1
= control target key start
LH: loop header
LB: loop body
LE: loop exit
PB: predicated region body
PF: predicated region fallthrough
CT: control target
= control target key end

     0   :  { %s1148_s0 = inlined_call_operand.vmem [shape: bf16[16,32], index: 0, kind: input, shape index: {}]   ;;  %s1149_s1 = inlined_call_operand.vmem [shape: bf16[32,384], index: 1, kind: input, shape index: {}]   ;;  %s1150_s2 = inlined_call_operand.vmem [shape: f32[1,384], index: 2, kind: input, shape index: {}]   ;;  %s1151_s3 = inlined_call_operand.vmem [shape: bf16[128,32], index: 3, kind: input, shape index: {}]   ;;  %s1152_s4 = inlined_call_operand.vmem [shape: f32[1,32], index: 4, kind: input, shape index: {}]   ;;  %s1153_s5 = inlined_call_operand.hbm [shape: f32[16,32], index: 5, kind: output, shape index: {}]  }
   0x1   :  { %v769_v0 = vld [vmem:[%s1149_s1 + $0x18] sm:$0xf]  ;;  %v839_v1 = vld [vmem:[%s1149_s1 + $0x20] sm:$0xf0]  ;;  %v838_v2 = vld [vmem:[%s1149_s1 + $0x1c] sm:$0xf] }
   0x2   :  { %v770_v3 = vor.u32 %v839_v1, %v769_v0  ;;  %v771_v4 = vld [vmem:[%s1149_s1 + $0x24] sm:$0xf0]  ;;  %v757_v5 = vld [vmem:[%s1149_s1] sm:$0xf]  ;;  %v836_v6 = vld [vmem:[%s1149_s1 + $0x8] sm:$0xf0] }
   0x3   :  { %v774_v7 = vor.u32 %v838_v2, %v771_v4  ;;  %v835_v8 = vld [vmem:[%s1149_s1 + $0x4] sm:$0xf]  ;;  %v759_v9 = vld [vmem:[%s1149_s1 + $0xc] sm:$0xf0]  ;;  %v758_v10 = vor.u32 %v836_v6, %v757_v5 }
   0x4   :  { %87 = vmatpush.bf16.msra.mxu0 %v770_v3 }
   0x5   :  { %10 = vsyncpa [#allocation3], 0  ;;  %101 = vmatpush.bf16.msra.mxu1 %v774_v7  ;;  %v762_v11 = vor.u32 %v835_v8, %v759_v9  ;;  %v977_v12 = vld [vmem:[%s1148_s0] sm:$0xff]  ;;  %vm77_vm0 = vcmask 261120   ;;  %s914_s0 = smov 96   ;;  %s916_s13 = smov 64  }
   0x6   :  { %v986_v13 = vld [vmem:[%s1150_s2] sm:$0x7]  ;;  %s915_s2 = smov 32   ;;  %vm205_vm1 = vcmask 1043456   ;;  %vm175_vm2 = vcmask 64512   ;;  %s739_s15 = sshll.u32 %s1153_s5, 4  ;;  %s740_s15 = int_to_ptr.hbm [resolvable:$true] %s739_s15 }
   0x7   :  { %v34_v14 = vperm.slane %v986_v13, 0  ;;  %v35_v15 = vperm.slane %v986_v13, 1  ;;  %v777_v9 = vld [vmem:[%s1149_s1 + $0x20] sm:$0xf]  ;;  %s919_s16 = smov 8  }
   0x8   :  { %88 = vmatpush.bf16.msra.mxu0 %v758_v10  ;;  %v840_v10 = vld [vmem:[%s1149_s1 + $0x28] sm:$0xf0] }
   0x9   :  { %102 = vmatpush.bf16.msra.mxu1 %v762_v11  ;;  %v778_v11 = vor.u32 %v840_v10, %v777_v9 }
   0xb   :  { %779 = vmatmul.msk.bf16.vlgmr.msra.gmra.mxu0 %vm77_vm0, %v977_v12  ;;  %115 = vmatpush.bf16.msra.mxu2 %v778_v11 }
   0xc   :  { %780 = vmatmul.msk.bf16.vlgmr.msra.gmra.mxu1 %vm77_vm0, %v977_v12 }
  0x88   :  { %v90_v16 = vpop.f32.mrf.mxu0 }
  0x89   :  { %v91_v17 = vadd.f32 %v90_v16, %v34_v14  ;;  %v104_v18 = vpop.f32.mrf.mxu1 }
  0x8a   :  { %v105_v19 = vadd.f32 %v104_v18, %v35_v15 }
  0x8c   :  { %v990_v20 = vpack.c.bf16 %v105_v19, %v91_v17 }
  0x8e   :  { %v128_v21 = vunpack.c.l.b16 %v990_v20  ;;  %v248_v30 = vrot.slane %v990_v20, 4 }
  0x90   :  { %v92_v22 = vpop.f32.mrf.mxu0  ;;  %v129_v23 = vpack.c.b16 %v128_v21, %v128_v21  ;;  %v262_v33 = vsel %vm77_vm0, %v248_v30, 0 }
  0x91   :  { %v93_v24 = vadd.f32 %v92_v22, %v34_v14  ;;  %v106_v25 = vpop.f32.mrf.mxu1  ;;  %v765_v14 = vld [vmem:[%s1149_s1 + $0x8] sm:$0xf] }
  0x92   :  { %v107_v26 = vadd.f32 %v106_v25, %v35_v15  ;;  %130 = vrot.lane.b32.xlu0 %v129_v23, %s914_s0  ;;  %v837_v15 = vld [vmem:[%s1149_s1 + $0x10] sm:$0xf0] }
  0x93   :  { %v766_v16 = vor.u32 %v837_v15, %v765_v14  ;;  %v844_v15 = vld [vmem:[%s1151_s3 + $0x18] sm:$0xff] }
  0x94   :  { %v994_v27 = vpack.c.bf16 %v107_v26, %v93_v24 }
  0x95   :  { %116 = vmatpush.bf16.msra.mxu2 %v766_v16  ;;  %v843_v16 = vld [vmem:[%s1151_s3 + $0x10] sm:$0xff] }
  0x96   :  { %v152_v28 = vunpack.c.l.b16 %v994_v27  ;;  %v249_v34 = vrot.slane %v994_v27, 4 }
  0x98   :  { %v997_v29 = vpack.c.b16 %v152_v28, %v152_v28  ;;  %v283_v37 = vsel %vm77_vm0, %v249_v34, 0  ;;  %781 = vmatmul.msk.bf16.vlgmr.msra.gmra.mxu2 %vm77_vm0, %v977_v12 }
  0x9a   :  { %154 = vrot.lane.b32.xlu1 %v997_v29, %s914_s0  ;;  %256 = vrot.lane.b32.xlu0 %v129_v23, %s915_s2 }
  0xa2   :  { %277 = vrot.lane.b32.xlu1 %v997_v29, %s915_s2 }
  0xaa   :  { %200 = vrot.lane.b32.xlu1 %v129_v23, %s916_s13 }
  0xb2   :  { %250 = vrot.lane.b32.xlu1 %v990_v20, %s914_s0 }
  0xba   :  { %423 = vrot.lane.b32.xlu1 %v990_v20, %s916_s13 }
 0x104   :  { %v131_v31 = vpop.permute.xlu0 %130 }
 0x105   :  { %v136_v32 = vsel %vm77_vm0, %v131_v31, 0 }
 0x106   :  { %145 = vmatpush.bf16.xpose.msra.mxu3 %v136_v32 }
 0x10c   :  { %v155_v35 = vpop.permute.xlu1 %154  ;;  %v257_v39 = vpop.permute.xlu0 %256 }
 0x10d   :  { %782 = vmatmul.msk.bf16.vlgmr.msra.gmra.mxu3 %vm77_vm0, %v990_v20  ;;  %v160_v36 = vsel %vm77_vm0, %v155_v35, 0 }
 0x10e   :  { %271 = vmatpush.bf16.xpose.msrb.mxu3 %v262_v33  ;;  %169 = vmatpush.bf16.xpose.msrb.mxu0 %v160_v36 }
 0x114   :  { %v278_v38 = vpop.permute.xlu1 %277 }
 0x115   :  { %783 = vmatmul.msk.bf16.vlgmr.msrb.gmra.mxu0 %vm77_vm0, %v994_v27 }
 0x116   :  { %292 = vmatpush.bf16.xpose.msra.mxu0 %v283_v37  ;;  %386 = vmatpush.bf16.msra.mxu3 %v844_v15 }
 0x11a   :  { %387 = vmatpush.bf16.msra.mxu3 %v843_v16 }
 0x11c   :  { %v201_v40 = vpop.permute.xlu1 %200 }
 0x11d   :  { %786 = vmatmul.msk.bf16.vlgmr.msrb.gmra.mxu3 %vm77_vm0, %v257_v39  ;;  %v207_v41 = vsel %vm205_vm1, %v201_v40, 0 }
 0x11e   :  { %216 = vmatpush.bf16.msrb.mxu1 %v207_v41 }
 0x124   :  { %v251_v42 = vpop.permute.xlu1 %250 }
 0x125   :  { %v254_v43 = vrot.slane %v251_v42, 4  ;;  %787 = vmatmul.msk.bf16.vlgmr.msra.gmra.mxu0 %vm77_vm0, %v278_v38 }
 0x127   :  { %v326_v44 = vsel %vm205_vm1, %v254_v43, 0 }
 0x128   :  { %335 = vmatpush.bf16.msra.mxu1 %v326_v44 }
 0x12c   :  { %v1028_v56 = vpop.permute.xlu1 %423 }
 0x12d   :  { %v427_v37 = vrot.slane %v1028_v56, 4 }
 0x190   :  { %v147_v45 = vpop.f32.mrf.mxu3 }
 0x191   :  { %v176_v46 = vsel %vm175_vm2, %v147_v45, -inf }
 0x192   :  { %v171_v47 = vpop.f32.mrf.mxu0  ;;  %177 = vmax.xlane.f32.xlu2 %v176_v46  ;;  %v36_v46 = vperm.slane %v986_v13, 2 }
 0x193   :  { %v179_v48 = vsel %vm175_vm2, %v171_v47, -inf }
 0x194   :  { %180 = vmax.xlane.f32.xlu1 %v179_v48 }
 0x198   :  { %v149_v49 = vpop.f32.mrf.mxu3 }
 0x19a   :  { %v173_v50 = vpop.f32.mrf.mxu0 }
 0x1a0   :  { %v273_v51 = vpop.f32.mrf.mxu3 }
 0x1a1   :  { %v298_v52 = vsel %vm175_vm2, %v273_v51, -inf }
 0x1a2   :  { %v1026_v53 = vpop.f32.mrf.mxu0  ;;  %299 = vmax.xlane.f32.xlu2 %v298_v52 }
 0x1a3   :  { %v301_v8 = vsel %vm175_vm2, %v1026_v53, -inf }
 0x1a8   :  { %v275_v54 = vpop.f32.mrf.mxu3 }
 0x1aa   :  { %v296_v55 = vpop.f32.mrf.mxu0 }
 0x205   :  { %v178_v57 = vpop.xlane.xlu2 %177 }
 0x206   :  { %v182_v58 = vsub.f32 %v147_v45, %v178_v57 }
 0x207   :  { %v181_v59 = vpop.xlane.xlu1 %180 }
 0x208   :  { %v184_v60 = vmul.f32 1.442695, %v182_v58  ;;  %v183_v61 = vsub.f32 %v171_v47, %v181_v59  ;;  %v118_v47 = vpop.f32.mrf.mxu2 }
 0x209   :  { %v119_v48 = vadd.f32 %v118_v47, %v36_v46 }
 0x20a   :  { %856 = vpow2.f32 %v184_v60  ;;  %v186_v62 = vmul.f32 1.442695, %v183_v61 }
 0x20b   :  { %v124_v49 = vpack.c.bf16 %v119_v48, %v119_v48 }
 0x20c   :  { %858 = vpow2.f32 %v186_v62 }
 0x20d   :  { %v572_v50 = vunpack.c.l.b16 %v124_v49 }
 0x20f   :  { %v1074_v52 = vpack.c.b16 %v572_v50, %v572_v50 }
 0x210   :  { %v857_v63 = vpop.eup %856 }
 0x211   :  { %v188_v0 = vsel %vm175_vm2, %v857_v63, 0.0 }
 0x212   :  { %189 = vadd.xlane.f32.xlu0 %v188_v0  ;;  %v859_v2 = vpop.eup %858 }
 0x213   :  { %v191_v5 = vsel %vm175_vm2, %v859_v2, 0.0 }
 0x215   :  { %v300_v1 = vpop.xlane.xlu2 %299 }
 0x216   :  { %v304_v3 = vsub.f32 %v273_v51, %v300_v1  ;;  %v842_v51 = vld [vmem:[%s1151_s3 + $0x8] sm:$0xff] }
 0x217   :  { %415 = vmatpush.bf16.msrb.mxu0 %v842_v51 }
 0x218   :  { %v306_v4 = vmul.f32 1.442695, %v304_v3 }
 0x21a   :  { %860 = vpow2.f32 %v306_v4  ;;  %192 = vadd.xlane.f32.xlu0 %v191_v5 }
 0x220   :  { %v861_v6 = vpop.eup %860 }
 0x221   :  { %v310_v7 = vsel %vm175_vm2, %v861_v6, 0.0 }
 0x222   :  { %311 = vadd.xlane.f32.xlu2 %v310_v7 }
 0x22e   :  { %222 = vrot.lane.b32.xlu0 %v997_v29, %s916_s13 }
 0x236   :  { %252 = vrot.lane.b32.xlu0 %v994_v27, %s914_s0 }
 0x23a   :  { %429 = vrot.lane.b32.xlu2 %v990_v20, %s915_s2 }
 0x263   :  { %302 = vmax.xlane.f32.xlu2 %v301_v8 }
 0x27b   :  { %431 = vrot.lane.b32.xlu2 %v994_v27, %s915_s2 }
 0x285   :  { %v190_v17 = vpop.xlane.xlu0 %189 }
 0x286   :  { %862 = vrcp.f32 %v190_v17  ;;  %v501_v17 = vsel %vm205_vm1, %v124_v49, 0 }
 0x287   :  { %510 = vmatpush.bf16.msrb.mxu3 %v501_v17 }
 0x28c   :  { %v863_v18 = vpop.eup %862 }
 0x28d   :  { %v196_v19 = vmul.f32 %v863_v18, %v857_v63  ;;  %v193_v21 = vpop.xlane.xlu0 %192 }
 0x28e   :  { %864 = vrcp.f32 %v193_v21 }
 0x28f   :  { %v198_v20 = vpack.c.bf16 %v196_v19, %v196_v19 }
 0x291   :  { %784 = vmatmul.msk.bf16.vlgmr.msrb.gmra.mxu1 %vm175_vm2, %v198_v20 }
 0x294   :  { %v865_v23 = vpop.eup %864 }
 0x295   :  { %v312_v22 = vpop.xlane.xlu2 %311  ;;  %v197_v12 = vmul.f32 %v865_v23, %v859_v2 }
 0x296   :  { %866 = vrcp.f32 %v312_v22 }
 0x297   :  { %v199_v33 = vpack.c.bf16 %v197_v12, %v197_v12 }
 0x29c   :  { %v867_v24 = vpop.eup %866 }
 0x29d   :  { %v318_v25 = vmul.f32 %v867_v24, %v861_v6  ;;  %v430_v26 = vpop.permute.xlu2 %429 }
 0x29e   :  { %v433_v28 = vrot.slane %v430_v26, 4 }
 0x29f   :  { %v320_v29 = vpack.c.bf16 %v318_v25, %v318_v25 }
 0x2a0   :  { %v439_v30 = vsel %vm77_vm0, %v433_v28, 0  ;;  %v223_v31 = vpop.permute.xlu0 %222 }
 0x2a1   :  { %788 = vmatmul.msk.bf16.vlgmr.msra.gmra.mxu1 %vm175_vm2, %v320_v29  ;;  %v228_v32 = vsel %vm205_vm1, %v223_v31, 0 }
 0x2a2   :  { %448 = vmatpush.bf16.xpose.msrb.mxu1 %v439_v30  ;;  %237 = vmatpush.bf16.msrb.mxu2 %v228_v32 }
 0x2a5   :  { %785 = vmatmul.msk.bf16.vlgmr.msrb.gmra.mxu2 %vm175_vm2, %v199_v33 }
 0x2a8   :  { %v253_v34 = vpop.permute.xlu0 %252 }
 0x2a9   :  { %v255_v35 = vrot.slane %v253_v34, 4 }
 0x2ab   :  { %v345_v36 = vsel %vm205_vm1, %v255_v35, 0 }
 0x2ac   :  { %354 = vmatpush.bf16.msra.mxu2 %v345_v36 }
 0x2b1   :  { %808 = vmatmul.msk.bf16.vlgmr.msrb.gmra.mxu1 %vm77_vm0, %v427_v37 }
 0x2d6   :  { %v303_v38 = vpop.xlane.xlu2 %302 }
 0x2d7   :  { %v305_v39 = vsub.f32 %v1026_v53, %v303_v38  ;;  %v120_v53 = vpop.f32.mrf.mxu2 }
 0x2d8   :  { %v121_v54 = vadd.f32 %v120_v53, %v36_v46 }
 0x2d9   :  { %v308_v40 = vmul.f32 1.442695, %v305_v39 }
 0x2da   :  { %v126_v55 = vpack.c.bf16 %v121_v54, %v121_v54 }
 0x2db   :  { %868 = vpow2.f32 %v308_v40 }
 0x2dc   :  { %v598_v13 = vunpack.c.l.b16 %v126_v55  ;;  %v520_v56 = vsel %vm205_vm1, %v126_v55, 0 }
 0x2de   :  { %v432_v41 = vpop.permute.xlu2 %431  ;;  %v1082_v57 = vpack.c.b16 %v598_v13, %v598_v13 }
 0x2df   :  { %v434_v42 = vrot.slane %v432_v41, 4 }
 0x2e1   :  { %v869_v43 = vpop.eup %868  ;;  %v458_v44 = vsel %vm77_vm0, %v434_v42, 0 }
 0x2e2   :  { %467 = vmatpush.bf16.xpose.msrb.mxu2 %v458_v44  ;;  %v313_v45 = vsel %vm175_vm2, %v869_v43, 0.0 }
 0x2e3   :  { %314 = vadd.xlane.f32.xlu1 %v313_v45 }
 0x2fc   :  { %425 = vrot.lane.b32.xlu1 %v994_v27, %s916_s13  ;;  %v841_v27 = vld [vmem:[%s1151_s3] sm:$0xff] }
 0x2fd   :  { %416 = vmatpush.bf16.msrb.mxu0 %v841_v27 }
 0x301   :  { %529 = vmatpush.bf16.msra.mxu0 %v520_v56 }
 0x304   :  { %576 = vrot.lane.b32.xlu1 %v1074_v52, %s916_s13 }
 0x30c   :  { %602 = vrot.lane.b32.xlu1 %v1082_v57, %s916_s13 }
 0x30e   :  { %v218_v58 = vpop.f32.mrf.mxu1 }
 0x314   :  { %574 = vrot.lane.b32.xlu1 %v1074_v52, %s914_s0 }
 0x316   :  { %v220_v59 = vpop.f32.mrf.mxu1 }
 0x31e   :  { %v337_v60 = vpop.f32.mrf.mxu1 }
 0x326   :  { %v339_v61 = vpop.f32.mrf.mxu1 }
 0x328   :  { %v239_v62 = vpop.f32.mrf.mxu2 }
 0x329   :  { %v243_v63 = vpack.c.bf16 %v239_v62, %v218_v58 }
 0x32b   :  { %807 = vmatmul.msk.bf16.vlgmr.msrb.gmra.mxu0 %vm77_vm0, %v243_v63 }
 0x32e   :  { %v450_v0 = vpop.f32.mrf.mxu1 }
 0x32f   :  { %v473_v1 = vsel %vm175_vm2, %v450_v0, -inf }
 0x330   :  { %474 = vmax.xlane.f32.xlu0 %v473_v1  ;;  %v241_v2 = vpop.f32.mrf.mxu2 }
 0x336   :  { %v452_v3 = vpop.f32.mrf.mxu1 }
 0x344   :  { %600 = vrot.lane.b32.xlu0 %v1082_v57, %s914_s0 }
 0x356   :  { %v315_v4 = vpop.xlane.xlu1 %314 }
 0x357   :  { %870 = vrcp.f32 %v315_v4 }
 0x35d   :  { %v871_v5 = vpop.eup %870 }
 0x35e   :  { %v319_v6 = vmul.f32 %v871_v5, %v869_v43 }
 0x360   :  { %v321_v7 = vpack.c.bf16 %v319_v6, %v319_v6 }
 0x362   :  { %789 = vmatmul.msk.bf16.vlgmr.msra.gmra.mxu2 %vm175_vm2, %v321_v7  ;;  %v845_v7 = vld [vmem:[%s1151_s3 + $0x20] sm:$0xff] }
 0x36e   :  { %v426_v8 = vpop.permute.xlu1 %425 }
 0x36f   :  { %v428_v9 = vrot.slane %v426_v8, 4 }
 0x372   :  { %809 = vmatmul.msk.bf16.vlgmr.msrb.gmra.mxu2 %vm77_vm0, %v428_v9 }
 0x376   :  { %v577_v10 = vpop.permute.xlu1 %576 }
 0x377   :  { %v582_v11 = vsel %vm77_vm0, %v577_v10, 0 }
 0x378   :  { %591 = vmatpush.bf16.xpose.msra.mxu2 %v582_v11 }
 0x37e   :  { %v603_v14 = vpop.permute.xlu1 %602 }
 0x37f   :  { %v608_v25 = vsel %vm77_vm0, %v603_v14, 0 }
 0x386   :  { %v575_v18 = vpop.permute.xlu1 %574 }
 0x387   :  { %821 = vmatmul.msk.bf16.vlgmr.msra.gmra.mxu2 %vm77_vm0, %v575_v18 }
 0x3a3   :  { %v475_v19 = vpop.xlane.xlu0 %474 }
 0x3a4   :  { %v479_v20 = vsub.f32 %v450_v0, %v475_v19  ;;  %v846_v0 = vld [vmem:[%s1151_s3 + $0x28] sm:$0xff] }
 0x3a5   :  { %561 = vmatpush.bf16.msra.mxu1 %v846_v0 }
 0x3a6   :  { %v481_v21 = vmul.f32 1.442695, %v479_v20 }
 0x3a8   :  { %872 = vpow2.f32 %v481_v21  ;;  %v418_v8 = vpop.f32.mrf.mxu0 }
 0x3a9   :  { %562 = vmatpush.bf16.msra.mxu1 %v845_v7 }
 0x3ae   :  { %v873_v22 = vpop.eup %872 }
 0x3af   :  { %v485_v23 = vsel %vm175_vm2, %v873_v22, 0.0 }
 0x3b0   :  { %486 = vadd.xlane.f32.xlu2 %v485_v23  ;;  %v420_v9 = vpop.f32.mrf.mxu0 }
 0x3b6   :  { %v601_v38 = vpop.permute.xlu0 %600 }
 0x3e5   :  { %v356_v24 = vpop.f32.mrf.mxu2 }
 0x3e6   :  { %v360_v26 = vpack.c.bf16 %v356_v24, %v337_v60 }
 0x3e8   :  { %798 = vmatmul.msk.bf16.vlgmr.msra.gmra.mxu3 %vm77_vm0, %v360_v26  ;;  %v847_v26 = vld [vmem:[%s1151_s3 + $0x30] sm:$0xff] }
 0x3e9   :  { %617 = vmatpush.bf16.xpose.msra.mxu3 %v608_v25 }
 0x3ed   :  { %v358_v28 = vpop.f32.mrf.mxu2 }
 0x3f5   :  { %v469_v12 = vpop.f32.mrf.mxu2 }
 0x3f6   :  { %v476_v29 = vsel %vm175_vm2, %v469_v12, -inf }
 0x3f7   :  { %477 = vmax.xlane.f32.xlu1 %v476_v29 }
 0x3fd   :  { %v471_v30 = vpop.f32.mrf.mxu2 }
 0x40a   :  { %v593_v31 = vpop.f32.mrf.mxu2 }
 0x40b   :  { %v623_v32 = vsel %vm175_vm2, %v593_v31, -inf }
 0x40c   :  { %624 = vmax.xlane.f32.xlu0 %v623_v32 }
 0x410   :  { %647 = vrot.lane.b32.xlu1 %v1074_v52, %s915_s2 }
 0x412   :  { %v595_v33 = vpop.f32.mrf.mxu2 }
 0x423   :  { %v487_v34 = vpop.xlane.xlu2 %486 }
 0x424   :  { %874 = vrcp.f32 %v487_v34 }
 0x42a   :  { %v875_v35 = vpop.eup %874 }
 0x42b   :  { %v493_v36 = vmul.f32 %v875_v35, %v873_v22  ;;  %v848_v22 = vld [vmem:[%s1151_s3 + $0x38] sm:$0xff]  ;;  %s917_s3 = smov [#allocation2]  }
 0x42c   :  { %715 = vmatpush.bf16.msrb.mxu2 %v848_v22 }
 0x42d   :  { %v495_v37 = vpack.c.bf16 %v493_v36, %v493_v36 }
 0x42f   :  { %810 = vmatmul.msk.bf16.vlgmr.msrb.gmra.mxu3 %vm175_vm2, %v495_v37 }
 0x430   :  { %716 = vmatpush.bf16.msrb.mxu2 %v847_v26 }
 0x43f   :  { %822 = vmatmul.msk.bf16.vlgmr.msra.gmra.mxu3 %vm77_vm0, %v601_v38 }
 0x46a   :  { %v478_v39 = vpop.xlane.xlu1 %477 }
 0x46b   :  { %v480_v40 = vsub.f32 %v469_v12, %v478_v39  ;;  %v389_v46 = vpop.f32.mrf.mxu3 }
 0x46c   :  { %v419_v23 = vadd.f32 %v418_v8, %v389_v46 }
 0x46d   :  { %v483_v41 = vmul.f32 1.442695, %v480_v40 }
 0x46f   :  { %876 = vpow2.f32 %v483_v41 }
 0x473   :  { %v1114_v47 = vpop.f32.mrf.mxu3 }
 0x474   :  { %v421_v35 = vadd.f32 %v420_v9, %v1114_v47 }
 0x475   :  { %v877_v42 = vpop.eup %876 }
 0x476   :  { %v488_v43 = vsel %vm175_vm2, %v877_v42, 0.0 }
 0x477   :  { %489 = vadd.xlane.f32.xlu2 %v488_v43 }
 0x47f   :  { %v625_v49 = vpop.xlane.xlu0 %624 }
 0x480   :  { %v629_v50 = vsub.f32 %v593_v31, %v625_v49  ;;  %v855_v31 = vld [vmem:[%s1152_s4] ss:$0 sm:$0xff]  ;;  %s918_s4 = smov 128  }
 0x482   :  { %v648_v44 = vpop.permute.xlu1 %647  ;;  %v631_v52 = vmul.f32 1.442695, %v629_v50 }
 0x483   :  { %v653_v45 = vsel %vm205_vm1, %v648_v44, 0 }
 0x484   :  { %662 = vmatpush.bf16.msrb.mxu0 %v653_v45  ;;  %878 = vpow2.f32 %v631_v52 }
 0x48a   :  { %v879_v55 = vpop.eup %878 }
 0x48b   :  { %v635_v56 = vsel %vm175_vm2, %v879_v55, 0.0 }
 0x4b2   :  { %v512_v48 = vpop.f32.mrf.mxu3 }
 0x4ba   :  { %v514_v51 = vpop.f32.mrf.mxu3 }
 0x4c2   :  { %v619_v53 = vpop.f32.mrf.mxu3 }
 0x4c3   :  { %v626_v54 = vsel %vm175_vm2, %v619_v53, -inf }
 0x4c4   :  { %627 = vmax.xlane.f32.xlu2 %v626_v54 }
 0x4ca   :  { %v621_v13 = vpop.f32.mrf.mxu3 }
 0x4cc   :  { %636 = vadd.xlane.f32.xlu2 %v635_v56 }
 0x4ea   :  { %v490_v27 = vpop.xlane.xlu2 %489 }
 0x4eb   :  { %880 = vrcp.f32 %v490_v27 }
 0x4f1   :  { %v881_v58 = vpop.eup %880 }
 0x4f2   :  { %v494_v59 = vmul.f32 %v881_v58, %v877_v42 }
 0x4f4   :  { %v496_v60 = vpack.c.bf16 %v494_v59, %v494_v59 }
 0x4f6   :  { %811 = vmatmul.msk.bf16.vlgmr.msra.gmra.mxu0 %vm175_vm2, %v496_v60 }
 0x537   :  { %v628_v61 = vpop.xlane.xlu2 %627 }
 0x538   :  { %v630_v62 = vsub.f32 %v619_v53, %v628_v61 }
 0x53a   :  { %v633_v63 = vmul.f32 1.442695, %v630_v62 }
 0x53c   :  { %882 = vpow2.f32 %v633_v63 }
 0x53f   :  { %v637_v1 = vpop.xlane.xlu2 %636 }
 0x540   :  { %884 = vrcp.f32 %v637_v1 }
 0x542   :  { %v883_v2 = vpop.eup %882 }
 0x543   :  { %v638_v3 = vsel %vm175_vm2, %v883_v2, 0.0 }
 0x544   :  { %639 = vadd.xlane.f32.xlu2 %v638_v3 }
 0x546   :  { %v885_v4 = vpop.eup %884 }
 0x547   :  { %v643_v5 = vmul.f32 %v885_v4, %v879_v55 }
 0x549   :  { %v645_v6 = vpack.c.bf16 %v643_v5, %v643_v5 }
 0x54b   :  { %823 = vmatmul.msk.bf16.vlgmr.msrb.gmra.mxu0 %vm175_vm2, %v645_v6 }
 0x55c   :  { %668 = vrot.lane.b32.xlu2 %v1082_v57, %s915_s2  ;;  %s737_s2 = sshll.u32 %s917_s3, 4  ;;  %s738_s2 = int_to_ptr.vmem [resolvable:$true] %s737_s2 }
 0x573   :  { %v531_v10 = vpop.f32.mrf.mxu0 }
 0x574   :  { %v535_v11 = vpack.c.bf16 %v531_v10, %v512_v48 }
 0x576   :  { %820 = vmatmul.msk.bf16.vlgmr.msra.gmra.mxu1 %vm77_vm0, %v535_v11 }
 0x57b   :  { %v533_v14 = vpop.f32.mrf.mxu0 }
 0x5b7   :  { %v640_v15 = vpop.xlane.xlu2 %639 }
 0x5b8   :  { %886 = vrcp.f32 %v640_v15 }
 0x5be   :  { %v887_v16 = vpop.eup %886 }
 0x5bf   :  { %v644_v17 = vmul.f32 %v887_v16, %v883_v2  ;;  %v669_v18 = vpop.permute.xlu2 %668 }
 0x5c0   :  { %v674_v19 = vsel %vm205_vm1, %v669_v18, 0 }
 0x5c1   :  { %v646_v20 = vpack.c.bf16 %v644_v17, %v644_v17  ;;  %683 = vmatpush.bf16.msrb.mxu1 %v674_v19 }
 0x5c4   :  { %824 = vmatmul.msk.bf16.vlgmr.msrb.gmra.mxu1 %vm175_vm2, %v646_v20 }
 0x5c8   :  { %v664_v21 = vpop.f32.mrf.mxu0 }
 0x5d0   :  { %v666_v57 = vpop.f32.mrf.mxu0 }
 0x5f3   :  { %v564_v24 = vpop.f32.mrf.mxu1 }
 0x5f4   :  { %v569_v25 = vadd.f32 %v564_v24, %v419_v23 }
 0x5fb   :  { %v566_v28 = vpop.f32.mrf.mxu1 }
 0x5fc   :  { %v570_v36 = vadd.f32 %v566_v28, %v421_v35 }
 0x641   :  { %v685_v12 = vpop.f32.mrf.mxu1 }
 0x642   :  { %v689_v29 = vpack.c.bf16 %v685_v12, %v664_v21 }
 0x644   :  { %833 = vmatmul.msk.bf16.vlgmr.msrb.gmra.mxu2 %vm77_vm0, %v689_v29 }
 0x649   :  { %v687_v30 = vpop.f32.mrf.mxu1 }
 0x6c7   :  { %v718_v32 = vpop.f32.mrf.mxu2 }
 0x6c8   :  { %v723_v33 = vadd.f32 %v718_v32, %v569_v25 }
 0x6ca   :  { %v729_v34 = vadd.f32 %v855_v31, %v723_v33 }
 0x6cc   :  { %731 = vst.msk [vmem:[#allocation2] sm:$0xff] %vm77_vm0, %v729_v34 }
 0x6cf   :  { %v720_v37 = vpop.f32.mrf.mxu2 }
 0x6d0   :  { %v724_v38 = vadd.f32 %v720_v37, %v570_v36 }
 0x6d2   :  { %v730_v39 = vadd.f32 %v855_v31, %v724_v38 }
 0x6d4   :  { %732 = vst.msk [vmem:[#allocation2 + $0x8] sm:$0xff] %vm77_vm0, %v730_v39 }
 0x6d5   :  { %745 = dma.vmem_to_hbm [thread:$0]  %s738_s2, 256, %s740_s15, [#allocation3], %s918_s4, %s918_s4, %s919_s16  }
 0x6d6   :  { %912 = dma.done.wait [#allocation3], 256  }
 0x6d7   :  { %913 = vsyncadd [#allocation3], 4294967040 }
 0x6d8   :  { %750 = vsyncpa [#allocation3], 1 }

</bundles_post_ra>
